<compile_context>
chip_gen: v7x
topology: tpu7x:2x2x1
jax: 0.10.0
libtpu: 0.0.40
codegen_flags: <defaults>
</compile_context>

<pallas_src>
import functools

import jax
import jax.numpy as jnp
from jax.experimental import pallas as pl
from jax.experimental.pallas import tpu as pltpu


def _round_up(a, b):
    return ((a + b - 1) // b) * b


# ---------------------------------------------------------------------------
# Kernels
# ---------------------------------------------------------------------------
def _ffn_resident_kernel(x_ref, w1_ref, b1_ref, w2_ref, b2_ref, o_ref):
    # Full FFN for one row tile; whole weights are VMEM-resident (constant
    # block index -> fetched once for the whole grid).
    h = jnp.dot(x_ref[...], w1_ref[...], preferred_element_type=jnp.float32)
    h = jnp.maximum(h + b1_ref[...], 0.0)
    # TODO(synk): Dropout(p=0.1) omitted (inference mode => identity).
    y = jnp.dot(h.astype(w2_ref.dtype), w2_ref[...],
                preferred_element_type=jnp.float32)
    o_ref[...] = (y + b2_ref[...]).astype(o_ref.dtype)


def _ffn_stream_kernel_f32out(x_ref, w1_ref, b1_ref, w2_ref, b2_ref, o_ref):
    # f32 output: accumulate directly into the k-resident output tile
    # (same block index across k) -> no scratch, no final copy.
    k = pl.program_id(1)

    @pl.when(k == 0)
    def _init():
        o_ref[...] = jnp.broadcast_to(b2_ref[...], o_ref.shape).astype(o_ref.dtype)

    h = jnp.dot(x_ref[...], w1_ref[...], preferred_element_type=jnp.float32)
    h = jnp.maximum(h + b1_ref[...], 0.0)
    o_ref[...] += jnp.dot(h.astype(w2_ref.dtype), w2_ref[...],
                          preferred_element_type=jnp.float32)


def _ffn_stream_kernel_acc(x_ref, w1_ref, b1_ref, w2_ref, b2_ref, o_ref, acc_ref):
    # Narrow (e.g. bf16) output: keep an f32 VMEM accumulator across k.
    k = pl.program_id(1)

    @pl.when(k == 0)
    def _init():
        acc_ref[...] = jnp.zeros_like(acc_ref)

    h = jnp.dot(x_ref[...], w1_ref[...], preferred_element_type=jnp.float32)
    h = jnp.maximum(h + b1_ref[...], 0.0)
    acc_ref[...] += jnp.dot(h.astype(w2_ref.dtype), w2_ref[...],
                            preferred_element_type=jnp.float32)

    @pl.when(k == pl.num_programs(1) - 1)
    def _finalize():
        o_ref[...] = (acc_ref[...] + b2_ref[...]).astype(o_ref.dtype)


# ---------------------------------------------------------------------------
# Wrapper
# ---------------------------------------------------------------------------
def _vmem_capacity_bytes():
    try:
        return int(pltpu.get_tpu_info().vmem_capacity_bytes)
    except Exception:
        return 64 << 20  # conservative default (v7x per-TC VMEM)


@functools.partial(
    jax.jit, static_argnames=("compute_dtype", "force_stream", "row_tile", "hidden_tile"))
def ffn_forward(x, w1, b1, w2, b2, mask=None, memory=None, *,
                compute_dtype=jnp.bfloat16, force_stream=False,
                row_tile=None, hidden_tile=None):
    """x: [B, S, C_in] -> [B, S, C_in]. mask/memory ignored (as in PyTorch)."""
    del mask, memory  # unused by the reference forward
    B, S, C_in = x.shape
    H = w1.shape[1]
    M = B * S

    out_dtype = x.dtype
    wbytes = jnp.dtype(compute_dtype).itemsize
    obytes = jnp.dtype(out_dtype).itemsize

    # ---- hardware-aware budget --------------------------------------------
    vmem_cap = _vmem_capacity_bytes()
    budget = vmem_cap - (16 << 20)            # headroom for Mosaic internals
    two_core_chip = vmem_cap <= (96 << 20)    # v7x: 64 MiB VMEM, 2 TCs/chip

    # ---- padded channel / hidden dims (exact zero padding, lane-dense) ----
    Cp = _round_up(C_in, 128)
    Hp = _round_up(H, 128)

    # ---- row tile -----------------------------------------------------------
    if row_tile is not None:
        TM = max(8, min(_round_up(row_tile, 8), _round_up(M, 8)))
    else:
        tm_target = 512 if two_core_chip else 1024
        TM = min(tm_target, _round_up(M, 8))
        if two_core_chip and pl.cdiv(M, TM) < 2 and M >= 512:
            # make the "parallel" row axis span both TensorCores on v7x
            TM = _round_up(pl.cdiv(M, 2), 8)
    grid_m = pl.cdiv(M, TM)

    # ---- VMEM working-set estimates (double-buffered BlockSpec inputs) ----
    def _resident_bytes(tm):
        return (2 * tm * Cp * (wbytes + obytes)            # x + out tiles
                + 2 * (Cp * Hp + Hp * Cp) * wbytes         # full weights
                + 2 * (Hp + Cp) * 4                        # biases (f32)
                + tm * Hp * 6)                             # f32 h + bf16 copy

    def _stream_bytes(tm, th):
        acc = 0 if out_dtype == jnp.float32 else tm * Cp * 4
        return (2 * tm * Cp * (wbytes + obytes)
                + 2 * (Cp * th + th * Cp) * wbytes
                + 2 * (th + Cp) * 4
                + tm * th * 6 + acc)

    use_resident = (not force_stream) and (_resident_bytes(TM) <= budget)

    TH = grid_k = None
    if not use_resident:
        if hidden_tile is not None:
            TH = min(_round_up(hidden_tile, 128), Hp)
        else:
            TH = min(1024, Hp)
            for cand in range(TH, 127, -128):     # prefer a divisor of Hp
                if Hp % cand == 0:
                    TH = cand
                    break
            while TH > 128 and _stream_bytes(TM, TH) > budget:
                TH -= 128
            while TM > 8 and _stream_bytes(TM, TH) > budget:
                TM = max(8, _round_up(TM // 2, 8))
            grid_m = pl.cdiv(M, TM)
        Hp = _round_up(Hp, TH)
        grid_k = Hp // TH

    # ---- operand prep (bf16 MXU operands, f32 biases; zero pads are exact) -
    x2d = x.reshape(M, C_in)
    if Cp != C_in:
        x2d = jnp.pad(x2d, ((0, 0), (0, Cp - C_in)))
    x2d = x2d.astype(compute_dtype)

    w1p = jnp.pad(w1, ((0, Cp - C_in), (0, Hp - H))) if (Cp, Hp) != (C_in, H) else w1
    w1p = w1p.astype(compute_dtype)
    b1p = jnp.pad(b1, ((0, 0), (0, Hp - H))) if Hp != H else b1
    b1p = b1p.astype(jnp.float32)
    w2p = jnp.pad(w2, ((0, Hp - H), (0, Cp - C_in))) if (Hp, Cp) != (H, C_in) else w2
    w2p = w2p.astype(compute_dtype)
    b2p = jnp.pad(b2, ((0, 0), (0, Cp - C_in))) if Cp != C_in else b2
    b2p = b2p.astype(jnp.float32)

    # ---- VMEM limit (capped against physical capacity) + cost hint ---------
    needed = _resident_bytes(TM) if use_resident else _stream_bytes(TM, TH)
    vmem_limit = int(min(max(needed + (8 << 20), 32 << 20), vmem_cap - (8 << 20)))

    wt_reads = 1 if use_resident else grid_m   # weights re-streamed per row tile
    cost = pl.CostEstimate(
        flops=int(4 * M * Hp * Cp),
        transcendentals=0,
        bytes_accessed=int(M * Cp * (wbytes + obytes)
                           + wt_reads * (Cp * Hp + Hp * Cp) * wbytes
                           + wt_reads * (Hp + Cp) * 4),
    )

    if use_resident:
        out2d = pl.pallas_call(
            _ffn_resident_kernel,
            out_shape=jax.ShapeDtypeStruct((M, Cp), out_dtype),
            grid_spec=pltpu.PrefetchScalarGridSpec(
                num_scalar_prefetch=0,
                grid=(grid_m,),
                in_specs=[
                    pl.BlockSpec((TM, Cp), lambda i: (i, 0)),   # x rows
                    pl.BlockSpec((Cp, Hp), lambda i: (0, 0)),   # w1 (resident)
                    pl.BlockSpec((1, Hp), lambda i: (0, 0)),    # b1
                    pl.BlockSpec((Hp, Cp), lambda i: (0, 0)),   # w2 (resident)
                    pl.BlockSpec((1, Cp), lambda i: (0, 0)),    # b2
                ],
                out_specs=pl.BlockSpec((TM, Cp), lambda i: (i, 0)),
            ),
            compiler_params=pltpu.CompilerParams(
                dimension_semantics=("parallel",),
                vmem_limit_bytes=vmem_limit),
            cost_estimate=cost,
        )(x2d, w1p, b1p, w2p, b2p)
    else:
        if out_dtype == jnp.float32:
            kernel, scratch = _ffn_stream_kernel_f32out, []
        else:
            kernel, scratch = _ffn_stream_kernel_acc, [pltpu.VMEM((TM, Cp), jnp.float32)]
        out2d = pl.pallas_call(
            kernel,
            out_shape=jax.ShapeDtypeStruct((M, Cp), out_dtype),
            grid_spec=pltpu.PrefetchScalarGridSpec(
                num_scalar_prefetch=0,
                grid=(grid_m, grid_k),
                in_specs=[
                    pl.BlockSpec((TM, Cp), lambda i, k: (i, 0)),   # x rows
                    pl.BlockSpec((Cp, TH), lambda i, k: (0, k)),   # w1 slice
                    pl.BlockSpec((1, TH), lambda i, k: (0, k)),    # b1 slice
                    pl.BlockSpec((TH, Cp), lambda i, k: (k, 0)),   # w2 slice
                    pl.BlockSpec((1, Cp), lambda i, k: (0, 0)),    # b2
                ],
                out_specs=pl.BlockSpec((TM, Cp), lambda i, k: (i, 0)),
                scratch_shapes=scratch,
            ),
            compiler_params=pltpu.CompilerParams(
                dimension_semantics=("parallel", "arbitrary"),
                vmem_limit_bytes=vmem_limit),
            cost_estimate=cost,
        )(x2d, w1p, b1p, w2p, b2p)

    return out2d[:, :C_in].reshape(B, S, C_in)


def init_ffn_params(key, C_in, multiplier, dtype=jnp.float32):
    """Deterministic init matching PyTorch Linear shapes (stored [in, out])."""
    H = C_in * multiplier
    k1, k2, k3, k4 = jax.random.split(key, 4)
    lim1 = 1.0 / (C_in ** 0.5)
    lim2 = 1.0 / (H ** 0.5)
    w1 = jax.random.uniform(k1, (C_in, H), dtype, -lim1, lim1)
    b1 = jax.random.uniform(k2, (1, H), dtype, -lim1, lim1)
    w2 = jax.random.uniform(k3, (H, C_in), dtype, -lim2, lim2)
    b2 = jax.random.uniform(k4, (1, C_in), dtype, -lim2, lim2)
    return w1, b1, w2, b2


def _ref_ffn(x, w1, b1, w2, b2):
    B, S, C = x.shape
    y = jnp.maximum(x.reshape(-1, C) @ w1 + b1, 0.0) @ w2 + b2
    return y.reshape(B, S, C)


if __name__ == "__main__":
    key = jax.random.PRNGKey(0)
    B, S, C_in = 2, 8, 32
    kx, kx2, kpa, kpb = jax.random.split(key, 4)

    x = jax.random.normal(kx, (B, S, C_in), dtype=jnp.float32)
    mask = jnp.ones((B, S), dtype=jnp.float32)  # ignored, as in the reference
    w1a, b1a, w2a, b2a = init_ffn_params(kpa, C_in, multiplier=4)   # H = 128
    w1b, b1b, w2b, b2b = init_ffn_params(kpb, C_in, multiplier=8)   # H = 256
    ref_a = _ref_ffn(x, w1a, b1a, w2a, b2a)
    ref_b = _ref_ffn(x, w1b, b1b, w2b, b2b)

    # 1) weights-resident path, exact f32 math
    out = ffn_forward(x, w1a, b1a, w2a, b2a, mask=mask, compute_dtype=jnp.float32)
    jax.block_until_ready(out)
    assert out.shape == (B, S, C_in)
    assert jnp.allclose(out, ref_a, atol=1e-5, rtol=1e-5), float(jnp.max(jnp.abs(out - ref_a)))

    # 2) production default: bf16 MXU operands (resident path)
    out = ffn_forward(x, w1a, b1a, w2a, b2a, mask=mask)
    jax.block_until_ready(out)
    assert jnp.allclose(out, ref_a, atol=1e-1, rtol=1e-1), float(jnp.max(jnp.abs(out - ref_a)))

    # 3) hidden-streaming path (2 k-steps), exact f32 math, f32 output accumulation
    out = ffn_forward(x, w1b, b1b, w2b, b2b, mask=mask, compute_dtype=jnp.float32,
                      force_stream=True, hidden_tile=128)
    jax.block_until_ready(out)
    assert jnp.allclose(out, ref_b, atol=1e-5, rtol=1e-5), float(jnp.max(jnp.abs(out - ref_b)))

    # 4) bf16 in/out + streaming: exercises the f32 scratch-accumulator kernel
    out = ffn_forward(x.astype(jnp.bfloat16), w1b, b1b, w2b, b2b, mask=mask,
                      force_stream=True, hidden_tile=128)
    jax.block_until_ready(out)
    assert out.dtype == jnp.bfloat16
    assert jnp.allclose(out.astype(jnp.float32), ref_b, atol=1.5e-1, rtol=1.5e-1)

    # 5) partial last row tile (M=14 with TM=8), exact f32 math
    x5 = jax.random.normal(kx2, (2, 7, C_in), dtype=jnp.float32)
    ref5 = _ref_ffn(x5, w1a, b1a, w2a, b2a)
    out = ffn_forward(x5, w1a, b1a, w2a, b2a, compute_dtype=jnp.float32, row_tile=8)
    jax.block_until_ready(out)
    assert jnp.allclose(out, ref5, atol=1e-5, rtol=1e-5), float(jnp.max(jnp.abs(out - ref5)))

    print("KERNEL_OK")
</pallas_src>

<mosaic_0001>
module attributes {stable_mosaic.version = 11 : i64} {
  func.func @_ffn_resident_kernel(%arg0: i32, %arg1: memref<16x128xf32, #tpu.memory_space<vmem>>, %arg2: memref<128x128xf32, #tpu.memory_space<vmem>>, %arg3: memref<1x128xf32, #tpu.memory_space<vmem>>, %arg4: memref<128x128xf32, #tpu.memory_space<vmem>>, %arg5: memref<1x128xf32, #tpu.memory_space<vmem>>, %arg6: memref<16x128xf32, #tpu.memory_space<vmem>>) attributes {dimension_semantics = [#tpu.dimension_semantics<parallel>], iteration_bounds = array<i64: 1>, scalar_prefetch = 0 : i64, scratch_operands = 0 : i64, tpu.core_type = #tpu.core_type<tc>, window_params = [{transform_indices = @transform_0, window_bounds = array<i64: 16, 128>}, {pipeline_mode = #tpu.pipeline_mode<synchronous>, transform_indices = @transform_1, window_bounds = array<i64: 128, 128>}, {pipeline_mode = #tpu.pipeline_mode<synchronous>, transform_indices = @transform_2, window_bounds = array<i64: 1, 128>}, {pipeline_mode = #tpu.pipeline_mode<synchronous>, transform_indices = @transform_3, window_bounds = array<i64: 128, 128>}, {pipeline_mode = #tpu.pipeline_mode<synchronous>, transform_indices = @transform_4, window_bounds = array<i64: 1, 128>}, {transform_indices = @transform_5, window_bounds = array<i64: 16, 128>}]} {
    %c0 = arith.constant 0 : index
    %c0_0 = arith.constant 0 : index
    %0 = vector.load %arg1[%c0, %c0_0] : memref<16x128xf32, #tpu.memory_space<vmem>>, vector<16x128xf32>
    %c0_1 = arith.constant 0 : index
    %c0_2 = arith.constant 0 : index
    %1 = vector.load %arg2[%c0_1, %c0_2] : memref<128x128xf32, #tpu.memory_space<vmem>>, vector<128x128xf32>
    %cst = arith.constant dense<0.000000e+00> : vector<16x128xf32>
    %2 = tpu.matmul %0, %1, %cst {dimension_numbers = #tpu.dot_dimension_numbers<[1], [0], [0], [1], [0, 0, 1, 1], [], []>} : vector<16x128xf32>, vector<128x128xf32>, vector<16x128xf32> -> vector<16x128xf32>
    %c0_3 = arith.constant 0 : index
    %c0_4 = arith.constant 0 : index
    %3 = vector.load %arg3[%c0_3, %c0_4] : memref<1x128xf32, #tpu.memory_space<vmem>>, vector<1x128xf32>
    %4 = vector.broadcast %3 : vector<1x128xf32> to vector<16x128xf32>
    %5 = arith.addf %2, %4 : vector<16x128xf32>
    %cst_5 = arith.constant 0.000000e+00 : f32
    %6 = vector.broadcast %cst_5 : f32 to vector<16x128xf32>
    %7 = arith.maximumf %5, %6 : vector<16x128xf32>
    %c0_6 = arith.constant 0 : index
    %c0_7 = arith.constant 0 : index
    %8 = vector.load %arg4[%c0_6, %c0_7] : memref<128x128xf32, #tpu.memory_space<vmem>>, vector<128x128xf32>
    %cst_8 = arith.constant dense<0.000000e+00> : vector<16x128xf32>
    %9 = tpu.matmul %7, %8, %cst_8 {dimension_numbers = #tpu.dot_dimension_numbers<[1], [0], [0], [1], [0, 0, 1, 1], [], []>} : vector<16x128xf32>, vector<128x128xf32>, vector<16x128xf32> -> vector<16x128xf32>
    %c0_9 = arith.constant 0 : index
    %c0_10 = arith.constant 0 : index
    %10 = vector.load %arg5[%c0_9, %c0_10] : memref<1x128xf32, #tpu.memory_space<vmem>>, vector<1x128xf32>
    %11 = vector.broadcast %10 : vector<1x128xf32> to vector<16x128xf32>
    %12 = arith.addf %9, %11 : vector<16x128xf32>
    %c0_11 = arith.constant 0 : index
    %c0_12 = arith.constant 0 : index
    %13 = vector.load %arg6[%c0_11, %c0_12] : memref<16x128xf32, #tpu.memory_space<vmem>>, vector<16x128xf32>
    tpu.vector_store %arg6[%c0_11, %c0_12], %12 {strides = array<i32>} : memref<16x128xf32, #tpu.memory_space<vmem>>, vector<16x128xf32>,
    return
  }
  func.func @transform_0(%arg0: i32) -> (i32, i32) {
    %c0_i32 = arith.constant 0 : i32
    %c0_i32_0 = arith.constant 0 : i32
    return %arg0, %c0_i32 : i32, i32
  }
  func.func @transform_1(%arg0: i32) -> (i32, i32) {
    %c0_i32 = arith.constant 0 : i32
    %c0_i32_0 = arith.constant 0 : i32
    %c0_i32_1 = arith.constant 0 : i32
    return %c0_i32, %c0_i32_0 : i32, i32
  }
  func.func @transform_2(%arg0: i32) -> (i32, i32) {
    %c0_i32 = arith.constant 0 : i32
    %c0_i32_0 = arith.constant 0 : i32
    %c0_i32_1 = arith.constant 0 : i32
    return %c0_i32, %c0_i32_0 : i32, i32
  }
  func.func @transform_3(%arg0: i32) -> (i32, i32) {
    %c0_i32 = arith.constant 0 : i32
    %c0_i32_0 = arith.constant 0 : i32
    %c0_i32_1 = arith.constant 0 : i32
    return %c0_i32, %c0_i32_0 : i32, i32
  }
  func.func @transform_4(%arg0: i32) -> (i32, i32) {
    %c0_i32 = arith.constant 0 : i32
    %c0_i32_0 = arith.constant 0 : i32
    %c0_i32_1 = arith.constant 0 : i32
    return %c0_i32, %c0_i32_0 : i32, i32
  }
  func.func @transform_5(%arg0: i32) -> (i32, i32) {
    %c0_i32 = arith.constant 0 : i32
    %c0_i32_0 = arith.constant 0 : i32
    return %arg0, %c0_i32 : i32, i32
  }
}

</mosaic_0001>

<bundles_post_ra>
// kernel: ffn_forward.1
= control target key start
LH: loop header
LB: loop body
LE: loop exit
PB: predicated region body
PF: predicated region fallthrough
CT: control target
= control target key end

     0   :  { %s542_s1 = inlined_call_operand.vmem [shape: f32[128,128], index: 1, kind: input, shape index: {}]   ;;  %s543_s0 = inlined_call_operand.vmem [shape: f32[16,128], index: 0, kind: input, shape index: {}]   ;;  %s544_s3 = inlined_call_operand.vmem [shape: f32[128,128], index: 3, kind: input, shape index: {}]   ;;  %s545_s2 = inlined_call_operand.vmem [shape: f32[1,128], index: 2, kind: input, shape index: {}]   ;;  %s546_s4 = inlined_call_operand.vmem [shape: f32[1,128], index: 4, kind: input, shape index: {}]   ;;  %s547_s5 = inlined_call_operand.vmem [shape: f32[16,128], index: 5, kind: output, shape index: {}]  }
   0x1   :  { %v22_v0 = vld [vmem:[%s542_s1] sm:$0xff]  ;;  %v23_v1 = vld [vmem:[%s542_s1 + $0x8] sm:$0xff]  ;;  %v24_v2 = vld [vmem:[%s542_s1 + $0x10] sm:$0xff] }
   0x2   :  { %v334_v3 = vpack.c.bf16 %v23_v1, %v22_v0  ;;  %v25_v4 = vld [vmem:[%s542_s1 + $0x18] sm:$0xff]  ;;  %v26_v6 = vld [vmem:[%s542_s1 + $0x20] sm:$0xff]  ;;  %v27_v7 = vld [vmem:[%s542_s1 + $0x28] sm:$0xff] }
   0x3   :  { %v338_v5 = vpack.c.bf16 %v25_v4, %v24_v2  ;;  %v342_v8 = vpack.c.bf16 %v27_v7, %v26_v6  ;;  %v28_v9 = vld [vmem:[%s542_s1 + $0x30] sm:$0xff]  ;;  %v29_v10 = vld [vmem:[%s542_s1 + $0x38] sm:$0xff]  ;;  %v20_v11 = vld [vmem:[%s543_s0] sm:$0xff] }
   0x4   :  { %335 = vmatprep.subr.bf16.mxu0 %v334_v3  ;;  %296 = vmatprep.mubr.f32.mxu0 %v20_v11  ;;  %v122_v12 = vld [vmem:[%s544_s3] sm:$0xff]  ;;  %v123_v13 = vld [vmem:[%s544_s3 + $0x8] sm:$0xff]  ;;  %v124_v14 = vld [vmem:[%s544_s3 + $0x10] sm:$0xff]  ;;  %v346_v20 = vpack.c.bf16 %v29_v10, %v28_v9 }
   0x5   :  { %337 = vmatpush3.bf16.msra.mxu0 %v334_v3  ;;  %v366_v15 = vpack.c.bf16 %v123_v13, %v122_v12  ;;  %v125_v16 = vld [vmem:[%s544_s3 + $0x18] sm:$0xff]  ;;  %v126_v18 = vld [vmem:[%s544_s3 + $0x20] sm:$0xff]  ;;  %v127_v19 = vld [vmem:[%s544_s3 + $0x28] sm:$0xff] }
   0x6   :  { %339 = vmatprep.subr.bf16.mxu0 %v338_v5  ;;  %v370_v17 = vpack.c.bf16 %v125_v16, %v124_v14  ;;  %v30_v21 = vld [vmem:[%s542_s1 + $0x40] sm:$0xff]  ;;  %v31_v22 = vld [vmem:[%s542_s1 + $0x48] sm:$0xff]  ;;  %v374_v23 = vpack.c.bf16 %v127_v19, %v126_v18  ;;  %v128_v24 = vld [vmem:[%s544_s3 + $0x30] sm:$0xff] }
   0x7   :  { %367 = vmatprep.subr.bf16.mxu1 %v366_v15  ;;  %v129_v25 = vld [vmem:[%s544_s3 + $0x38] sm:$0xff]  ;;  %v350_v26 = vpack.c.bf16 %v31_v22, %v30_v21  ;;  %v32_v27 = vld [vmem:[%s542_s1 + $0x50] sm:$0xff]  ;;  %v130_v30 = vld [vmem:[%s544_s3 + $0x40] sm:$0xff] }
   0x8   :  { %369 = vmatpush3.bf16.msra.mxu1 %v366_v15  ;;  %v33_v28 = vld [vmem:[%s542_s1 + $0x58] sm:$0xff]  ;;  %v378_v29 = vpack.c.bf16 %v129_v25, %v128_v24  ;;  %v131_v31 = vld [vmem:[%s544_s3 + $0x48] sm:$0xff]  ;;  %v34_v33 = vld [vmem:[%s542_s1 + $0x60] sm:$0xff] }
   0x9   :  { %341 = vmatpush3.bf16.msra.mxu0 %v338_v5  ;;  %371 = vmatprep.subr.bf16.mxu1 %v370_v17  ;;  %v354_v32 = vpack.c.bf16 %v33_v28, %v32_v27  ;;  %v35_v34 = vld [vmem:[%s542_s1 + $0x68] sm:$0xff]  ;;  %v382_v35 = vpack.c.bf16 %v131_v31, %v130_v30  ;;  %v132_v36 = vld [vmem:[%s544_s3 + $0x50] sm:$0xff]  ;;  %v133_v37 = vld [vmem:[%s544_s3 + $0x58] sm:$0xff] }
   0xa   :  { %343 = vmatprep.subr.bf16.mxu0 %v342_v8  ;;  %v358_v38 = vpack.c.bf16 %v35_v34, %v34_v33  ;;  %v36_v39 = vld [vmem:[%s542_s1 + $0x70] sm:$0xff]  ;;  %v37_v40 = vld [vmem:[%s542_s1 + $0x78] sm:$0xff]  ;;  %v386_v41 = vpack.c.bf16 %v133_v37, %v132_v36  ;;  %v134_v42 = vld [vmem:[%s544_s3 + $0x60] sm:$0xff] }
   0xb   :  { %v135_v43 = vld [vmem:[%s544_s3 + $0x68] sm:$0xff]  ;;  %v362_v44 = vpack.c.bf16 %v37_v40, %v36_v39  ;;  %v136_v47 = vld [vmem:[%s544_s3 + $0x70] sm:$0xff]  ;;  %v137_v48 = vld [vmem:[%s544_s3 + $0x78] sm:$0xff] }
   0xc   :  { %373 = vmatpush3.bf16.msra.mxu1 %v370_v17  ;;  %v390_v45 = vpack.c.bf16 %v135_v43, %v134_v42  ;;  %v21_v46 = vld [vmem:[%s543_s0 + $0x8] sm:$0xff]  ;;  %v394_v49 = vpack.c.bf16 %v137_v48, %v136_v47  ;;  %v226_v50 = vld [vmem:[%s545_s2] ss:$0 sm:$0xff] }
   0xd   :  { %345 = vmatpush3.bf16.msra.mxu0 %v342_v8  ;;  %375 = vmatprep.subr.bf16.mxu1 %v374_v23  ;;  %v227_v57 = vld [vmem:[%s546_s4] ss:$0 sm:$0xff] }
   0xe   :  { %347 = vmatprep.subr.bf16.mxu0 %v346_v20 }
  0x10   :  { %377 = vmatpush3.bf16.msra.mxu1 %v374_v23 }
  0x11   :  { %349 = vmatpush3.bf16.msra.mxu0 %v346_v20  ;;  %379 = vmatprep.subr.bf16.mxu1 %v378_v29 }
  0x12   :  { %351 = vmatprep.subr.bf16.mxu0 %v350_v26 }
  0x14   :  { %381 = vmatpush3.bf16.msra.mxu1 %v378_v29 }
  0x15   :  { %353 = vmatpush3.bf16.msra.mxu0 %v350_v26  ;;  %383 = vmatprep.subr.bf16.mxu1 %v382_v35 }
  0x16   :  { %355 = vmatprep.subr.bf16.mxu0 %v354_v32 }
  0x18   :  { %385 = vmatpush3.bf16.msra.mxu1 %v382_v35 }
  0x19   :  { %357 = vmatpush3.bf16.msra.mxu0 %v354_v32  ;;  %387 = vmatprep.subr.bf16.mxu1 %v386_v41 }
  0x1a   :  { %359 = vmatprep.subr.bf16.mxu0 %v358_v38 }
  0x1c   :  { %389 = vmatpush3.bf16.msra.mxu1 %v386_v41 }
  0x1d   :  { %361 = vmatpush3.bf16.msra.mxu0 %v358_v38  ;;  %391 = vmatprep.subr.bf16.mxu1 %v390_v45 }
  0x1e   :  { %363 = vmatprep.subr.bf16.mxu0 %v362_v44 }
  0x20   :  { %393 = vmatpush3.bf16.msra.mxu1 %v390_v45 }
  0x21   :  { %365 = vmatpush3.bf16.msra.mxu0 %v362_v44  ;;  %395 = vmatprep.subr.bf16.mxu1 %v394_v49 }
  0x24   :  { %297 = vmatmul.mubr.f32.vlgmr.msra.gmra.mrb[0].mxu0 %v21_v46  ;;  %397 = vmatpush3.bf16.msra.mxu1 %v394_v49 }
  0xf7   :  { %v298_v51 = vpop.f32.mrb[0].mxu0 }
  0xf8   :  { %v117_v52 = vadd.f32 %v298_v51, %v226_v50  ;;  %v111_v53 = vpop.f32.mrb[1].mxu0 }
  0xf9   :  { %v112_v54 = vadd.f32 %v226_v50, %v111_v53 }
  0xfa   :  { %v121_v56 = vmax.f32 %v117_v52, 0.0 }
  0xfb   :  { %v120_v55 = vmax.f32 %v112_v54, 0.0 }
  0xfd   :  { %331 = vmatprep.mubr.f32.mxu1 %v120_v55 }
  0xfe   :  { %332 = vmatmul.mubr.f32.vlgmr.msra.gmra.mrb[0].mxu1 %v121_v56 }
 0x1d1   :  { %v333_v58 = vpop.f32.mrb[0].mxu1 }
 0x1d2   :  { %v217_v59 = vadd.f32 %v333_v58, %v227_v57  ;;  %v211_v60 = vpop.f32.mrb[1].mxu1 }
 0x1d3   :  { %v212_v61 = vadd.f32 %v227_v57, %v211_v60 }
 0x1d4   :  { %221 = vst [vmem:[%s547_s5 + $0x8] sm:$0xff] %v217_v59 }
 0x1d5   :  { %220 = vst [vmem:[%s547_s5] sm:$0xff] %v212_v61 }

</bundles_post_ra>
